<compile_context>
chip_gen: v5e
topology: v5e:2x2
jax: 0.10.0
libtpu: 0.0.40
codegen_flags: <defaults>
</compile_context>

<pallas_src>
import functools

import jax
import jax.numpy as jnp
from jax.experimental import pallas as pl
from jax.experimental.pallas import tpu as pltpu


def _gelu_exact(x):
    # matches torch.nn.GELU() (erf-based, not tanh approximation)
    return 0.5 * x * (1.0 + jax.lax.erf(x * (2.0 ** -0.5)))


def _mxu_dot(x, y):
    # bf16 MXU operands, f32 accumulation; elementwise math stays f32.
    return jnp.dot(x.astype(jnp.bfloat16), y.astype(jnp.bfloat16),
                   preferred_element_type=jnp.float32)


# -----------------------------------------------------------------------------
# Single fused kernel: one grid step = (graph g, GAT layer l)
# -----------------------------------------------------------------------------
def fused_two_tower_kernel(emb_ref, cpt_w_ref, cpt_b_ref,
                           sent_ref, sent_w_ref, sent_b_ref,
                           adj_ref, w_ref, b_ref, a_ref,
                           o_ref, h_scr,
                           *, n_heads, head_dim, n_layers):
    l = pl.program_id(1)
    d = n_heads * head_dim

    # ---- layer 0: concept tower  GELU(emb @ W + b)  -> resident h in VMEM ---
    @pl.when(l == 0)
    def _concept_tower():
        x = emb_ref[0]                                                # (N, Din)
        h_scr[...] = _gelu_exact(_mxu_dot(x, cpt_w_ref[...]) + cpt_b_ref[...])
        # dropout_e is identity (eval / prob 0)

    # ---- one multi-head GAT layer (block-diagonal, per-graph) ---------------
    h = h_scr[...]                                                    # (N, D)
    wh = _mxu_dot(h, w_ref[0])                                        # (N, D)
    # all heads' attention coefficients in ONE matmul:
    #   coef[:, h] = a_src_h . wh_h     coef[:, H + h] = a_dst_h . wh_h
    coef = jnp.dot(wh, a_ref[0], preferred_element_type=jnp.float32)  # (N, 2H)
    mask = adj_ref[0] > 0.0                                           # (N, N)

    lane = jax.lax.broadcasted_iota(jnp.int32, (1, d), 1)             # (1, D)
    neg = jnp.float32(-1e30)
    acc = jnp.zeros_like(wh)                                          # (N, D)
    for head in range(n_heads):                                       # unrolled
        a_src = coef[:, head:head + 1]                                # (N, 1)
        a_dst = coef[:, n_heads + head:n_heads + head + 1]            # (N, 1)
        e = a_dst + a_src.T                                           # (N, N)
        e = jnp.where(e >= 0.0, e, 0.2 * e)                           # LeakyReLU
        e = jnp.where(mask, e, neg)
        e = e - jnp.max(e, axis=-1, keepdims=True)
        p = jnp.exp(e)                 # masked entries underflow to exactly 0
        alpha = p / jnp.sum(p, axis=-1, keepdims=True)
        # full-width aggregation + static lane selection (no 16-lane slices,
        # no concatenate); MXU has large headroom at these sizes.
        head_sel = jnp.logical_and(lane >= head * head_dim,
                                   lane < (head + 1) * head_dim)      # (1, D)
        acc = acc + jnp.where(head_sel, _mxu_dot(alpha, wh), 0.0)
    out = acc + b_ref[0]                                              # (N, D)

    # ---- intermediate layers: ELU, h stays resident in VMEM -----------------
    @pl.when(l < n_layers - 1)
    def _elu():
        h_scr[...] = jnp.where(out > 0.0, out, jnp.exp(out) - 1.0)

    # ---- last layer: sent tower + cosine -> probability epilogue ------------
    @pl.when(l == n_layers - 1)
    def _epilogue():
        s = _gelu_exact(_mxu_dot(sent_ref[0], sent_w_ref[...])
                        + sent_b_ref[...])                            # (1, D)
        eps = jnp.float32(1e-8)
        dot = jnp.sum(out * s, axis=-1, keepdims=True)                # (N, 1)
        xn = jnp.sqrt(jnp.sum(out * out, axis=-1, keepdims=True))     # (N, 1)
        sn = jnp.sqrt(jnp.sum(s * s, axis=-1, keepdims=True))         # (1, 1)
        cos = dot / (jnp.maximum(xn, eps) * jnp.maximum(sn, eps))
        o_ref[0] = ((cos + 1.0) * 0.5).T                              # (1, N)


# -----------------------------------------------------------------------------
# Parameters (deterministic synthetic init matching _init_weights:
# Linear/Embedding weights ~ N(0, 0.02), biases = 0).
# -----------------------------------------------------------------------------
def init_params(key, *, sent_dim, concept_dim, concept_in_dim, n_concept,
                n_gnn_layers, n_attn_head, init_range=0.02):
    ks = jax.random.split(key, 3 + n_gnn_layers)
    hd = concept_dim // n_attn_head
    p = {
        "emb_table": init_range * jax.random.normal(
            ks[0], (n_concept, concept_in_dim), jnp.float32),
        "cpt_w": init_range * jax.random.normal(
            ks[1], (concept_in_dim, concept_dim), jnp.float32),
        "cpt_b": jnp.zeros((concept_dim,), jnp.float32),
        "sent_w": init_range * jax.random.normal(
            ks[2], (sent_dim, concept_dim), jnp.float32),
        "sent_b": jnp.zeros((concept_dim,), jnp.float32),
        "gat": [],
    }
    for l in range(n_gnn_layers):
        kw, ka, kb = jax.random.split(ks[3 + l], 3)
        p["gat"].append(dict(
            w=init_range * jax.random.normal(kw, (concept_dim, concept_dim),
                                             jnp.float32),
            b=jnp.zeros((concept_dim,), jnp.float32),
            a_src=init_range * jax.random.normal(ka, (n_attn_head, hd),
                                                 jnp.float32),
            a_dst=init_range * jax.random.normal(kb, (n_attn_head, hd),
                                                 jnp.float32),
        ))
    return p


def _attn_matrix(a_src, a_dst):
    """(H, hd), (H, hd) -> block-diagonal (D, 2H) matrix so that wh @ A yields
    every head's src/dst attention coefficient in a single MXU matmul."""
    n_heads, head_dim = a_src.shape
    d = n_heads * head_dim
    m = jnp.zeros((d, 2 * n_heads), jnp.float32)
    for h in range(n_heads):
        m = m.at[h * head_dim:(h + 1) * head_dim, h].set(a_src[h])
        m = m.at[h * head_dim:(h + 1) * head_dim, n_heads + h].set(a_dst[h])
    return m


# -----------------------------------------------------------------------------
# Forward pass: wrapper-side glue (embedding gather, edge_index -> block-diag
# adjacency, per-layer weight stacking) + one fused pallas_call.
# -----------------------------------------------------------------------------
def two_tower_gnn_forward(params, sent_vecs, concept_ids, node_type_ids,
                          node_scores, adj_lengths, edge_index_ids,
                          edge_type_ids, *, n_attn_head):
    # node_type_ids / node_scores / adj_lengths are accepted for signature
    # parity but are never read by the reference forward either.
    # TODO(synk): edge_type_ids unused — a plain (non-relational) GAT ignores
    # edge types.
    b, n = concept_ids.shape
    din = params["emb_table"].shape[1]
    d = params["sent_w"].shape[1]
    hd = d // n_attn_head
    n_layers = len(params["gat"])
    sdim = sent_vecs.shape[-1]

    # Embedding gather stays an XLA gather at this vocab size.
    # TODO(synk): for large vocabularies, switch to an in-kernel DMA gather
    # (emb_table in pl.ANY + PrefetchScalarGridSpec scalar-prefetched ids).
    emb = params["emb_table"][concept_ids.reshape(-1)].reshape(b, n, din)

    # Block-diagonal adjacency with self-loops, stored as a bf16 mask:
    # adj[g, dst, src] = 1 iff there is a message src -> dst inside graph g.
    src, dst = edge_index_ids[0], edge_index_ids[1]
    adj = jnp.zeros((b, n, n), jnp.float32)
    adj = adj.at[dst // n, dst % n, src % n].set(1.0)
    adj = jnp.maximum(adj, jnp.eye(n, dtype=jnp.float32)[None])
    adj = adj.astype(jnp.bfloat16)

    # Stack per-layer GAT parameters along a leading layer axis.
    gat_w = jnp.stack([lp["w"] for lp in params["gat"]])                 # (L,D,D)
    gat_b = jnp.stack([lp["b"].reshape(1, d) for lp in params["gat"]])   # (L,1,D)
    gat_a = jnp.stack([_attn_matrix(lp["a_src"], lp["a_dst"])
                       for lp in params["gat"]])                         # (L,D,2H)

    kern = functools.partial(fused_two_tower_kernel, n_heads=n_attn_head,
                             head_dim=hd, n_layers=n_layers)
    logits = pl.pallas_call(
        kern,
        out_shape=jax.ShapeDtypeStruct((b, 1, n), jnp.float32),
        grid_spec=pltpu.PrefetchScalarGridSpec(
            num_scalar_prefetch=0,
            grid=(b, n_layers),
            in_specs=[
                pl.BlockSpec((1, n, din), lambda g, l: (g, 0, 0)),       # emb
                pl.BlockSpec((din, d), lambda g, l: (0, 0)),             # cpt_w
                pl.BlockSpec((1, d), lambda g, l: (0, 0)),               # cpt_b
                pl.BlockSpec((1, 1, sdim), lambda g, l: (g, 0, 0)),      # sent
                pl.BlockSpec((sdim, d), lambda g, l: (0, 0)),            # sent_w
                pl.BlockSpec((1, d), lambda g, l: (0, 0)),               # sent_b
                pl.BlockSpec((1, n, n), lambda g, l: (g, 0, 0)),         # adj
                pl.BlockSpec((1, d, d), lambda g, l: (l, 0, 0)),         # gat_w
                pl.BlockSpec((1, 1, d), lambda g, l: (l, 0, 0)),         # gat_b
                pl.BlockSpec((1, d, 2 * n_attn_head),
                             lambda g, l: (l, 0, 0)),                    # gat_a
            ],
            out_specs=pl.BlockSpec((1, 1, n), lambda g, l: (g, 0, 0)),
            scratch_shapes=[pltpu.VMEM((n, d), jnp.float32)],            # h
        ),
        compiler_params=pltpu.CompilerParams(
            dimension_semantics=("parallel", "arbitrary")),
    )(emb, params["cpt_w"], params["cpt_b"].reshape(1, d),
      sent_vecs.reshape(b, 1, sdim), params["sent_w"],
      params["sent_b"].reshape(1, d), adj, gat_w, gat_b, gat_a)
    return logits.reshape(b, n)


if __name__ == "__main__":
    B, N = 2, 8
    SENT_DIM, CONCEPT_DIM, CONCEPT_IN_DIM = 32, 32, 48
    N_CONCEPT, N_LAYERS, N_HEADS = 64, 2, 2
    E = 24

    key = jax.random.PRNGKey(0)
    kp, ks, kc, kg, kes, ked, ket = jax.random.split(key, 7)
    params = init_params(kp, sent_dim=SENT_DIM, concept_dim=CONCEPT_DIM,
                         concept_in_dim=CONCEPT_IN_DIM, n_concept=N_CONCEPT,
                         n_gnn_layers=N_LAYERS, n_attn_head=N_HEADS)

    sent_vecs = jax.random.normal(ks, (B, SENT_DIM), jnp.float32)
    concept_ids = jax.random.randint(kc, (B, N), 0, N_CONCEPT)
    node_type_ids = jnp.zeros((B, N), jnp.int32)
    node_scores = jnp.zeros((B, N, 1), jnp.float32)
    adj_lengths = jnp.full((B,), N, jnp.int32)
    # edges stay inside their own graph (flat node ids), as in the real data
    e_graph = jax.random.randint(kg, (E,), 0, B)
    e_src = jax.random.randint(kes, (E,), 0, N)
    e_dst = jax.random.randint(ked, (E,), 0, N)
    edge_index_ids = jnp.stack([e_graph * N + e_src, e_graph * N + e_dst])
    edge_type_ids = jax.random.randint(ket, (E,), 0, 4)

    logits = two_tower_gnn_forward(
        params, sent_vecs, concept_ids, node_type_ids, node_scores,
        adj_lengths, edge_index_ids, edge_type_ids, n_attn_head=N_HEADS)
    logits = jax.block_until_ready(logits)
    assert logits.shape == (B, N)
    assert bool(jnp.all(jnp.isfinite(logits)))
    print("KERNEL_OK")
</pallas_src>

<mosaic_0001>
module attributes {stable_mosaic.version = 11 : i64} {
  func.func @fused_two_tower_kernel(%arg0: i32, %arg1: i32, %arg2: memref<1x8x48xf32, #tpu.memory_space<vmem>>, %arg3: memref<48x32xf32, #tpu.memory_space<vmem>>, %arg4: memref<1x32xf32, #tpu.memory_space<vmem>>, %arg5: memref<1x1x32xf32, #tpu.memory_space<vmem>>, %arg6: memref<32x32xf32, #tpu.memory_space<vmem>>, %arg7: memref<1x32xf32, #tpu.memory_space<vmem>>, %arg8: memref<1x8x8xbf16, #tpu.memory_space<vmem>>, %arg9: memref<1x32x32xf32, #tpu.memory_space<vmem>>, %arg10: memref<1x1x32xf32, #tpu.memory_space<vmem>>, %arg11: memref<1x32x4xf32, #tpu.memory_space<vmem>>, %arg12: memref<1x1x8xf32, #tpu.memory_space<vmem>>, %arg13: memref<8x32xf32, #tpu.memory_space<vmem>>) attributes {dimension_semantics = [#tpu.dimension_semantics<parallel>, #tpu.dimension_semantics<arbitrary>], iteration_bounds = array<i64: 2, 2>, scalar_prefetch = 0 : i64, scratch_operands = 1 : i64, tpu.core_type = #tpu.core_type<tc>, window_params = [{transform_indices = @transform_0, window_bounds = array<i64: 1, 8, 48>}, {pipeline_mode = #tpu.pipeline_mode<synchronous>, transform_indices = @transform_1, window_bounds = array<i64: 48, 32>}, {pipeline_mode = #tpu.pipeline_mode<synchronous>, transform_indices = @transform_2, window_bounds = array<i64: 1, 32>}, {transform_indices = @transform_3, window_bounds = array<i64: 1, 1, 32>}, {pipeline_mode = #tpu.pipeline_mode<synchronous>, transform_indices = @transform_4, window_bounds = array<i64: 32, 32>}, {pipeline_mode = #tpu.pipeline_mode<synchronous>, transform_indices = @transform_5, window_bounds = array<i64: 1, 32>}, {transform_indices = @transform_6, window_bounds = array<i64: 1, 8, 8>}, {transform_indices = @transform_7, window_bounds = array<i64: 1, 32, 32>}, {transform_indices = @transform_8, window_bounds = array<i64: 1, 1, 32>}, {transform_indices = @transform_9, window_bounds = array<i64: 1, 32, 4>}, {transform_indices = @transform_10, window_bounds = array<i64: 1, 1, 8>}]} {
    %c0_i32 = arith.constant 0 : i32
    %0 = arith.cmpi eq, %arg1, %c0_i32 : i32
    %1 = arith.extui %0 : i1 to i32
    %c0_i32_0 = arith.constant 0 : i32
    %2 = arith.cmpi ne, %1, %c0_i32_0 : i32
    scf.if %2 {
      %c0_36 = arith.constant 0 : index
      %c0_37 = arith.constant 0 : index
      %c0_38 = arith.constant 0 : index
      %98 = vector.load %arg2[%c0_36, %c0_37, %c0_38] : memref<1x8x48xf32, #tpu.memory_space<vmem>>, vector<1x8x48xf32>
      %99 = vector.shape_cast %98 : vector<1x8x48xf32> to vector<8x48xf32>
      %c0_39 = arith.constant 0 : index
      %c0_40 = arith.constant 0 : index
      %100 = vector.load %arg3[%c0_39, %c0_40] : memref<48x32xf32, #tpu.memory_space<vmem>>, vector<48x32xf32>
      %101 = arith.truncf %99 : vector<8x48xf32> to vector<8x48xbf16>
      %102 = arith.truncf %100 : vector<48x32xf32> to vector<48x32xbf16>
      %cst_41 = arith.constant dense<0.000000e+00> : vector<8x32xf32>
      %103 = tpu.matmul %101, %102, %cst_41 {dimension_numbers = #tpu.dot_dimension_numbers<[1], [0], [0], [1], [0, 0, 1, 1], [], []>} : vector<8x48xbf16>, vector<48x32xbf16>, vector<8x32xf32> -> vector<8x32xf32>
      %c0_42 = arith.constant 0 : index
      %c0_43 = arith.constant 0 : index
      %104 = vector.load %arg4[%c0_42, %c0_43] : memref<1x32xf32, #tpu.memory_space<vmem>>, vector<1x32xf32>
      %105 = vector.broadcast %104 : vector<1x32xf32> to vector<8x32xf32>
      %106 = arith.addf %103, %105 : vector<8x32xf32>
      %cst_44 = arith.constant 5.000000e-01 : f32
      %107 = vector.broadcast %cst_44 : f32 to vector<8x32xf32>
      %108 = arith.mulf %107, %106 : vector<8x32xf32>
      %cst_45 = arith.constant 0.707106769 : f32
      %109 = vector.broadcast %cst_45 : f32 to vector<8x32xf32>
      %110 = arith.mulf %106, %109 : vector<8x32xf32>
      %111 = math.erf %110 : vector<8x32xf32>
      %cst_46 = arith.constant 1.000000e+00 : f32
      %112 = vector.broadcast %cst_46 : f32 to vector<8x32xf32>
      %113 = arith.addf %112, %111 : vector<8x32xf32>
      %114 = arith.mulf %108, %113 : vector<8x32xf32>
      %c0_47 = arith.constant 0 : index
      %c0_48 = arith.constant 0 : index
      %115 = vector.load %arg13[%c0_47, %c0_48] : memref<8x32xf32, #tpu.memory_space<vmem>>, vector<8x32xf32>
      tpu.vector_store %arg13[%c0_47, %c0_48], %114 {strides = array<i32>} : memref<8x32xf32, #tpu.memory_space<vmem>>, vector<8x32xf32>,
    } else {
    }
    %c0 = arith.constant 0 : index
    %c0_1 = arith.constant 0 : index
    %3 = vector.load %arg13[%c0, %c0_1] : memref<8x32xf32, #tpu.memory_space<vmem>>, vector<8x32xf32>
    %c0_2 = arith.constant 0 : index
    %c0_3 = arith.constant 0 : index
    %c0_4 = arith.constant 0 : index
    %4 = vector.load %arg9[%c0_2, %c0_3, %c0_4] : memref<1x32x32xf32, #tpu.memory_space<vmem>>, vector<1x32x32xf32>
    %5 = vector.shape_cast %4 : vector<1x32x32xf32> to vector<32x32xf32>
    %6 = arith.truncf %3 : vector<8x32xf32> to vector<8x32xbf16>
    %7 = arith.truncf %5 : vector<32x32xf32> to vector<32x32xbf16>
    %cst = arith.constant dense<0.000000e+00> : vector<8x32xf32>
    %8 = tpu.matmul %6, %7, %cst {dimension_numbers = #tpu.dot_dimension_numbers<[1], [0], [0], [1], [0, 0, 1, 1], [], []>} : vector<8x32xbf16>, vector<32x32xbf16>, vector<8x32xf32> -> vector<8x32xf32>
    %c0_5 = arith.constant 0 : index
    %c0_6 = arith.constant 0 : index
    %c0_7 = arith.constant 0 : index
    %9 = vector.load %arg11[%c0_5, %c0_6, %c0_7] : memref<1x32x4xf32, #tpu.memory_space<vmem>>, vector<1x32x4xf32>
    %10 = vector.shape_cast %9 : vector<1x32x4xf32> to vector<32x4xf32>
    %cst_8 = arith.constant dense<0.000000e+00> : vector<8x4xf32>
    %11 = tpu.matmul %8, %10, %cst_8 {dimension_numbers = #tpu.dot_dimension_numbers<[1], [0], [0], [1], [0, 0, 1, 1], [], []>} : vector<8x32xf32>, vector<32x4xf32>, vector<8x4xf32> -> vector<8x4xf32>
    %c0_9 = arith.constant 0 : index
    %c0_10 = arith.constant 0 : index
    %c0_11 = arith.constant 0 : index
    %12 = vector.load %arg8[%c0_9, %c0_10, %c0_11] : memref<1x8x8xbf16, #tpu.memory_space<vmem>>, vector<1x8x8xbf16>
    %13 = vector.shape_cast %12 : vector<1x8x8xbf16> to vector<8x8xbf16>
    %cst_12 = arith.constant 0.000000e+00 : bf16
    %14 = vector.broadcast %cst_12 : bf16 to vector<8x8xbf16>
    %15 = arith.cmpf ogt, %13, %14 : vector<8x8xbf16>
    %16 = tpu.iota {dimensions = array<i32: 1>} : vector<1x32xi32>
    %cst_13 = arith.constant 0.000000e+00 : f32
    %17 = vector.broadcast %cst_13 : f32 to vector<8x32xf32>
    %18 = vector.extract_strided_slice %11 {offsets = [0, 0], sizes = [8, 1], strides = [1, 1]} : vector<8x4xf32> to vector<8x1xf32>
    %19 = vector.extract_strided_slice %11 {offsets = [0, 2], sizes = [8, 1], strides = [1, 1]} : vector<8x4xf32> to vector<8x1xf32>
    %20 = tpu.transpose %18, [1, 0] : vector<8x1xf32> -> vector<1x8xf32>
    %21 = vector.broadcast %19 : vector<8x1xf32> to vector<8x8xf32>
    %22 = vector.broadcast %20 : vector<1x8xf32> to vector<8x8xf32>
    %23 = arith.addf %21, %22 : vector<8x8xf32>
    %cst_14 = arith.constant 0.000000e+00 : f32
    %24 = vector.broadcast %cst_14 : f32 to vector<8x8xf32>
    %25 = arith.cmpf oge, %23, %24 : vector<8x8xf32>
    %cst_15 = arith.constant 2.000000e-01 : f32
    %26 = vector.broadcast %cst_15 : f32 to vector<8x8xf32>
    %27 = arith.mulf %26, %23 : vector<8x8xf32>
    %28 = arith.select %25, %23, %27 : vector<8x8xi1>, vector<8x8xf32>
    %cst_16 = arith.constant -1.000000e+30 : f32
    %29 = vector.broadcast %cst_16 : f32 to vector<8x8xf32>
    %30 = arith.select %15, %28, %29 : vector<8x8xi1>, vector<8x8xf32>
    %cst_17 = arith.constant dense<0xFF800000> : vector<8xf32>
    %31 = vector.multi_reduction <maximumf>, %30, %cst_17 [1] : vector<8x8xf32> to vector<8xf32>
    %32 = vector.shape_cast %31 : vector<8xf32> to vector<8x1xf32>
    %33 = vector.broadcast %32 : vector<8x1xf32> to vector<8x8xf32>
    %34 = arith.subf %30, %33 : vector<8x8xf32>
    %35 = math.exp %34 : vector<8x8xf32>
    %cst_18 = arith.constant dense<0.000000e+00> : vector<8xf32>
    %36 = vector.multi_reduction <add>, %35, %cst_18 [1] : vector<8x8xf32> to vector<8xf32>
    %37 = vector.shape_cast %36 : vector<8xf32> to vector<8x1xf32>
    %38 = vector.broadcast %37 : vector<8x1xf32> to vector<8x8xf32>
    %39 = arith.divf %35, %38 : vector<8x8xf32>
    %c0_i32_19 = arith.constant 0 : i32
    %40 = vector.broadcast %c0_i32_19 : i32 to vector<1x32xi32>
    %41 = arith.cmpi sge, %16, %40 : vector<1x32xi32>
    %c16_i32 = arith.constant 16 : i32
    %42 = vector.broadcast %c16_i32 : i32 to vector<1x32xi32>
    %43 = arith.cmpi slt, %16, %42 : vector<1x32xi32>
    %44 = arith.andi %41, %43 : vector<1x32xi1>
    %45 = arith.truncf %39 : vector<8x8xf32> to vector<8x8xbf16>
    %46 = arith.truncf %8 : vector<8x32xf32> to vector<8x32xbf16>
    %cst_20 = arith.constant dense<0.000000e+00> : vector<8x32xf32>
    %47 = tpu.matmul %45, %46, %cst_20 {dimension_numbers = #tpu.dot_dimension_numbers<[1], [0], [0], [1], [0, 0, 1, 1], [], []>} : vector<8x8xbf16>, vector<8x32xbf16>, vector<8x32xf32> -> vector<8x32xf32>
    %cst_21 = arith.constant 0.000000e+00 : f32
    %48 = vector.shape_cast %44 : vector<1x32xi1> to vector<1x32xi1>
    %49 = vector.broadcast %48 : vector<1x32xi1> to vector<8x32xi1>
    %50 = vector.broadcast %cst_21 : f32 to vector<8x32xf32>
    %51 = arith.select %49, %47, %50 : vector<8x32xi1>, vector<8x32xf32>
    %52 = arith.addf %17, %51 : vector<8x32xf32>
    %53 = vector.extract_strided_slice %11 {offsets = [0, 1], sizes = [8, 1], strides = [1, 1]} : vector<8x4xf32> to vector<8x1xf32>
    %54 = vector.extract_strided_slice %11 {offsets = [0, 3], sizes = [8, 1], strides = [1, 1]} : vector<8x4xf32> to vector<8x1xf32>
    %55 = tpu.transpose %53, [1, 0] : vector<8x1xf32> -> vector<1x8xf32>
    %56 = vector.broadcast %54 : vector<8x1xf32> to vector<8x8xf32>
    %57 = vector.broadcast %55 : vector<1x8xf32> to vector<8x8xf32>
    %58 = arith.addf %56, %57 : vector<8x8xf32>
    %cst_22 = arith.constant 0.000000e+00 : f32
    %59 = vector.broadcast %cst_22 : f32 to vector<8x8xf32>
    %60 = arith.cmpf oge, %58, %59 : vector<8x8xf32>
    %cst_23 = arith.constant 2.000000e-01 : f32
    %61 = vector.broadcast %cst_23 : f32 to vector<8x8xf32>
    %62 = arith.mulf %61, %58 : vector<8x8xf32>
    %63 = arith.select %60, %58, %62 : vector<8x8xi1>, vector<8x8xf32>
    %cst_24 = arith.constant -1.000000e+30 : f32
    %64 = vector.broadcast %cst_24 : f32 to vector<8x8xf32>
    %65 = arith.select %15, %63, %64 : vector<8x8xi1>, vector<8x8xf32>
    %cst_25 = arith.constant dense<0xFF800000> : vector<8xf32>
    %66 = vector.multi_reduction <maximumf>, %65, %cst_25 [1] : vector<8x8xf32> to vector<8xf32>
    %67 = vector.shape_cast %66 : vector<8xf32> to vector<8x1xf32>
    %68 = vector.broadcast %67 : vector<8x1xf32> to vector<8x8xf32>
    %69 = arith.subf %65, %68 : vector<8x8xf32>
    %70 = math.exp %69 : vector<8x8xf32>
    %cst_26 = arith.constant dense<0.000000e+00> : vector<8xf32>
    %71 = vector.multi_reduction <add>, %70, %cst_26 [1] : vector<8x8xf32> to vector<8xf32>
    %72 = vector.shape_cast %71 : vector<8xf32> to vector<8x1xf32>
    %73 = vector.broadcast %72 : vector<8x1xf32> to vector<8x8xf32>
    %74 = arith.divf %70, %73 : vector<8x8xf32>
    %c16_i32_27 = arith.constant 16 : i32
    %75 = vector.broadcast %c16_i32_27 : i32 to vector<1x32xi32>
    %76 = arith.cmpi sge, %16, %75 : vector<1x32xi32>
    %c32_i32 = arith.constant 32 : i32
    %77 = vector.broadcast %c32_i32 : i32 to vector<1x32xi32>
    %78 = arith.cmpi slt, %16, %77 : vector<1x32xi32>
    %79 = arith.andi %76, %78 : vector<1x32xi1>
    %80 = arith.truncf %74 : vector<8x8xf32> to vector<8x8xbf16>
    %81 = arith.truncf %8 : vector<8x32xf32> to vector<8x32xbf16>
    %cst_28 = arith.constant dense<0.000000e+00> : vector<8x32xf32>
    %82 = tpu.matmul %80, %81, %cst_28 {dimension_numbers = #tpu.dot_dimension_numbers<[1], [0], [0], [1], [0, 0, 1, 1], [], []>} : vector<8x8xbf16>, vector<8x32xbf16>, vector<8x32xf32> -> vector<8x32xf32>
    %cst_29 = arith.constant 0.000000e+00 : f32
    %83 = vector.shape_cast %79 : vector<1x32xi1> to vector<1x32xi1>
    %84 = vector.broadcast %83 : vector<1x32xi1> to vector<8x32xi1>
    %85 = vector.broadcast %cst_29 : f32 to vector<8x32xf32>
    %86 = arith.select %84, %82, %85 : vector<8x32xi1>, vector<8x32xf32>
    %87 = arith.addf %52, %86 : vector<8x32xf32>
    %c0_30 = arith.constant 0 : index
    %c0_31 = arith.constant 0 : index
    %c0_32 = arith.constant 0 : index
    %88 = vector.load %arg10[%c0_30, %c0_31, %c0_32] : memref<1x1x32xf32, #tpu.memory_space<vmem>>, vector<1x1x32xf32>
    %89 = vector.shape_cast %88 : vector<1x1x32xf32> to vector<1x32xf32>
    %90 = vector.broadcast %89 : vector<1x32xf32> to vector<8x32xf32>
    %91 = arith.addf %87, %90 : vector<8x32xf32>
    %c1_i32 = arith.constant 1 : i32
    %92 = arith.cmpi slt, %arg1, %c1_i32 : i32
    %93 = arith.extui %92 : i1 to i32
    %c0_i32_33 = arith.constant 0 : i32
    %94 = arith.cmpi ne, %93, %c0_i32_33 : i32
    scf.if %94 {
      %cst_36 = arith.constant 0.000000e+00 : f32
      %98 = vector.broadcast %cst_36 : f32 to vector<8x32xf32>
      %99 = arith.cmpf ogt, %91, %98 : vector<8x32xf32>
      %100 = math.exp %91 : vector<8x32xf32>
      %cst_37 = arith.constant 1.000000e+00 : f32
      %101 = vector.broadcast %cst_37 : f32 to vector<8x32xf32>
      %102 = arith.subf %100, %101 : vector<8x32xf32>
      %103 = arith.select %99, %91, %102 : vector<8x32xi1>, vector<8x32xf32>
      %c0_38 = arith.constant 0 : index
      %c0_39 = arith.constant 0 : index
      %104 = vector.load %arg13[%c0_38, %c0_39] : memref<8x32xf32, #tpu.memory_space<vmem>>, vector<8x32xf32>
      tpu.vector_store %arg13[%c0_38, %c0_39], %103 {strides = array<i32>} : memref<8x32xf32, #tpu.memory_space<vmem>>, vector<8x32xf32>,
    } else {
    }
    %c1_i32_34 = arith.constant 1 : i32
    %95 = arith.cmpi eq, %arg1, %c1_i32_34 : i32
    %96 = arith.extui %95 : i1 to i32
    %c0_i32_35 = arith.constant 0 : i32
    %97 = arith.cmpi ne, %96, %c0_i32_35 : i32
    scf.if %97 {
      %c0_36 = arith.constant 0 : index
      %c0_37 = arith.constant 0 : index
      %c0_38 = arith.constant 0 : index
      %98 = vector.load %arg5[%c0_36, %c0_37, %c0_38] : memref<1x1x32xf32, #tpu.memory_space<vmem>>, vector<1x1x32xf32>
      %99 = vector.shape_cast %98 : vector<1x1x32xf32> to vector<1x32xf32>
      %c0_39 = arith.constant 0 : index
      %c0_40 = arith.constant 0 : index
      %100 = vector.load %arg6[%c0_39, %c0_40] : memref<32x32xf32, #tpu.memory_space<vmem>>, vector<32x32xf32>
      %101 = arith.truncf %99 : vector<1x32xf32> to vector<1x32xbf16>
      %102 = arith.truncf %100 : vector<32x32xf32> to vector<32x32xbf16>
      %cst_41 = arith.constant dense<0.000000e+00> : vector<1x32xf32>
      %103 = tpu.matmul %101, %102, %cst_41 {dimension_numbers = #tpu.dot_dimension_numbers<[1], [0], [0], [1], [0, 0, 1, 1], [], []>} : vector<1x32xbf16>, vector<32x32xbf16>, vector<1x32xf32> -> vector<1x32xf32>
      %c0_42 = arith.constant 0 : index
      %c0_43 = arith.constant 0 : index
      %104 = vector.load %arg7[%c0_42, %c0_43] : memref<1x32xf32, #tpu.memory_space<vmem>>, vector<1x32xf32>
      %105 = arith.addf %103, %104 : vector<1x32xf32>
      %cst_44 = arith.constant 5.000000e-01 : f32
      %106 = vector.broadcast %cst_44 : f32 to vector<1x32xf32>
      %107 = arith.mulf %106, %105 : vector<1x32xf32>
      %cst_45 = arith.constant 0.707106769 : f32
      %108 = vector.broadcast %cst_45 : f32 to vector<1x32xf32>
      %109 = arith.mulf %105, %108 : vector<1x32xf32>
      %110 = math.erf %109 : vector<1x32xf32>
      %cst_46 = arith.constant 1.000000e+00 : f32
      %111 = vector.broadcast %cst_46 : f32 to vector<1x32xf32>
      %112 = arith.addf %111, %110 : vector<1x32xf32>
      %113 = arith.mulf %107, %112 : vector<1x32xf32>
      %114 = vector.broadcast %113 : vector<1x32xf32> to vector<8x32xf32>
      %115 = arith.mulf %91, %114 : vector<8x32xf32>
      %cst_47 = arith.constant dense<0.000000e+00> : vector<8xf32>
      %116 = vector.multi_reduction <add>, %115, %cst_47 [1] : vector<8x32xf32> to vector<8xf32>
      %117 = vector.shape_cast %116 : vector<8xf32> to vector<8x1xf32>
      %118 = arith.mulf %91, %91 : vector<8x32xf32>
      %cst_48 = arith.constant dense<0.000000e+00> : vector<8xf32>
      %119 = vector.multi_reduction <add>, %118, %cst_48 [1] : vector<8x32xf32> to vector<8xf32>
      %120 = vector.shape_cast %119 : vector<8xf32> to vector<8x1xf32>
      %121 = math.sqrt %120 : vector<8x1xf32>
      %122 = arith.mulf %113, %113 : vector<1x32xf32>
      %cst_49 = arith.constant dense<0.000000e+00> : vector<1xf32>
      %123 = vector.multi_reduction <add>, %122, %cst_49 [1] : vector<1x32xf32> to vector<1xf32>
      %124 = vector.shape_cast %123 : vector<1xf32> to vector<1x1xf32>
      %125 = math.sqrt %124 : vector<1x1xf32>
      %cst_50 = arith.constant 9.99999993E-9 : f32
      %126 = vector.broadcast %cst_50 : f32 to vector<8x1xf32>
      %127 = arith.maximumf %121, %126 : vector<8x1xf32>
      %cst_51 = arith.constant 9.99999993E-9 : f32
      %128 = vector.broadcast %cst_51 : f32 to vector<1x1xf32>
      %129 = arith.maximumf %125, %128 : vector<1x1xf32>
      %130 = vector.broadcast %129 : vector<1x1xf32> to vector<8x1xf32>
      %131 = arith.mulf %127, %130 : vector<8x1xf32>
      %132 = arith.divf %117, %131 : vector<8x1xf32>
      %cst_52 = arith.constant 1.000000e+00 : f32
      %133 = vector.broadcast %cst_52 : f32 to vector<8x1xf32>
      %134 = arith.addf %132, %133 : vector<8x1xf32>
      %cst_53 = arith.constant 5.000000e-01 : f32
      %135 = vector.broadcast %cst_53 : f32 to vector<8x1xf32>
      %136 = arith.mulf %134, %135 : vector<8x1xf32>
      %137 = tpu.transpose %136, [1, 0] : vector<8x1xf32> -> vector<1x8xf32>
      %c0_54 = arith.constant 0 : index
      %c0_55 = arith.constant 0 : index
      %c0_56 = arith.constant 0 : index
      %138 = vector.load %arg12[%c0_54, %c0_55, %c0_56] : memref<1x1x8xf32, #tpu.memory_space<vmem>>, vector<1x1x8xf32>
      %139 = vector.shape_cast %138 : vector<1x1x8xf32> to vector<1x8xf32>
      %140 = vector.shape_cast %137 : vector<1x8xf32> to vector<1x1x8xf32>
      tpu.vector_store %arg12[%c0_54, %c0_55, %c0_56], %140 {strides = array<i32>} : memref<1x1x8xf32, #tpu.memory_space<vmem>>, vector<1x1x8xf32>,
    } else {
    }
    return
  }
  func.func @transform_0(%arg0: i32, %arg1: i32) -> (i32, i32, i32) {
    %c0_i32 = arith.constant 0 : i32
    %c0_i32_0 = arith.constant 0 : i32
    %c0_i32_1 = arith.constant 0 : i32
    return %arg0, %c0_i32, %c0_i32_0 : i32, i32, i32
  }
  func.func @transform_1(%arg0: i32, %arg1: i32) -> (i32, i32) {
    %c0_i32 = arith.constant 0 : i32
    %c0_i32_0 = arith.constant 0 : i32
    %c0_i32_1 = arith.constant 0 : i32
    return %c0_i32, %c0_i32_0 : i32, i32
  }
  func.func @transform_2(%arg0: i32, %arg1: i32) -> (i32, i32) {
    %c0_i32 = arith.constant 0 : i32
    %c0_i32_0 = arith.constant 0 : i32
    %c0_i32_1 = arith.constant 0 : i32
    return %c0_i32, %c0_i32_0 : i32, i32
  }
  func.func @transform_3(%arg0: i32, %arg1: i32) -> (i32, i32, i32) {
    %c0_i32 = arith.constant 0 : i32
    %c0_i32_0 = arith.constant 0 : i32
    %c0_i32_1 = arith.constant 0 : i32
    return %arg0, %c0_i32, %c0_i32_0 : i32, i32, i32
  }
  func.func @transform_4(%arg0: i32, %arg1: i32) -> (i32, i32) {
    %c0_i32 = arith.constant 0 : i32
    %c0_i32_0 = arith.constant 0 : i32
    %c0_i32_1 = arith.constant 0 : i32
    return %c0_i32, %c0_i32_0 : i32, i32
  }
  func.func @transform_5(%arg0: i32, %arg1: i32) -> (i32, i32) {
    %c0_i32 = arith.constant 0 : i32
    %c0_i32_0 = arith.constant 0 : i32
    %c0_i32_1 = arith.constant 0 : i32
    return %c0_i32, %c0_i32_0 : i32, i32
  }
  func.func @transform_6(%arg0: i32, %arg1: i32) -> (i32, i32, i32) {
    %c0_i32 = arith.constant 0 : i32
    %c0_i32_0 = arith.constant 0 : i32
    %c0_i32_1 = arith.constant 0 : i32
    return %arg0, %c0_i32, %c0_i32_0 : i32, i32, i32
  }
  func.func @transform_7(%arg0: i32, %arg1: i32) -> (i32, i32, i32) {
    %c0_i32 = arith.constant 0 : i32
    %c0_i32_0 = arith.constant 0 : i32
    %c0_i32_1 = arith.constant 0 : i32
    return %arg1, %c0_i32, %c0_i32_0 : i32, i32, i32
  }
  func.func @transform_8(%arg0: i32, %arg1: i32) -> (i32, i32, i32) {
    %c0_i32 = arith.constant 0 : i32
    %c0_i32_0 = arith.constant 0 : i32
    %c0_i32_1 = arith.constant 0 : i32
    return %arg1, %c0_i32, %c0_i32_0 : i32, i32, i32
  }
  func.func @transform_9(%arg0: i32, %arg1: i32) -> (i32, i32, i32) {
    %c0_i32 = arith.constant 0 : i32
    %c0_i32_0 = arith.constant 0 : i32
    %c0_i32_1 = arith.constant 0 : i32
    return %arg1, %c0_i32, %c0_i32_0 : i32, i32, i32
  }
  func.func @transform_10(%arg0: i32, %arg1: i32) -> (i32, i32, i32) {
    %c0_i32 = arith.constant 0 : i32
    %c0_i32_0 = arith.constant 0 : i32
    %c0_i32_1 = arith.constant 0 : i32
    return %arg0, %c0_i32, %c0_i32_0 : i32, i32, i32
  }
}

</mosaic_0001>

<bundles_post_ra>
// kernel: tpu_custom_call.1
= control target key start
LH: loop header
LB: loop body
LE: loop exit
PB: predicated region body
PF: predicated region fallthrough
CT: control target
= control target key end

     0   :  { %s1612_s0 = inlined_call_operand.vmem [shape: f32[2,8,48], index: 0, kind: input, shape index: {}]   ;;  %s1613_s1 = inlined_call_operand.vmem [shape: f32[48,32], index: 1, kind: input, shape index: {}]   ;;  %s1614_s2 = inlined_call_operand.vmem [shape: f32[1,32], index: 2, kind: input, shape index: {}]   ;;  %s1615_s3 = inlined_call_operand.vmem [shape: f32[2,1,32], index: 3, kind: input, shape index: {}]   ;;  %s1616_s4 = inlined_call_operand.vmem [shape: f32[32,32], index: 4, kind: input, shape index: {}]   ;;  %s1617_s5 = inlined_call_operand.vmem [shape: f32[1,32], index: 5, kind: input, shape index: {}]   ;;  %s1618_s6 = inlined_call_operand.vmem [shape: bf16[2,8,8], index: 6, kind: input, shape index: {}]   ;;  %s1619_s7 = inlined_call_operand.vmem [shape: f32[2,32,32], index: 7, kind: input, shape index: {}]   ;;  %s1620_s8 = inlined_call_operand.vmem [shape: f32[2,1,32], index: 8, kind: input, shape index: {}]   ;;  %s1621_s9 = inlined_call_operand.vmem [shape: f32[2,32,4], index: 9, kind: input, shape index: {}]   ;;  %s1622_s10 = inlined_call_operand.hbm [shape: f32[2,1,8], index: 10, kind: output, shape index: {}]  }
   0x1   :  { %1635 = sst [smem:[#allocation17_spill]] %s1622_s10 }
   0x2   :  { %15 = vsyncpa [#allocation4], 0 }
   0x3   :  { %17 = vsyncpa [#allocation4 + $0x1], 0  ;;  %s1377_s13 = smov 0   ;;  %s1379_s14 = smov 0  }
   0x4   :  { %s1381_s15 = smov 0   ;;  %s1383_s16 = smov 0  }
   0x5   :  { %s1385_s17 = smov 0   ;;  %s1387_s18 = smov 0  }
   0x6   :  { %s1389_s19 = smov 0   ;;  %s1391_s20 = smov 0  }
   0x7 LB: > { %1636 = sst [smem:[#allocation6_spill]] %s1289_s13  ;;  %s1095_s21 = sadd.s32 4294967295, %s1317_s20   ;;  %s1317_s20 = sphi %s1391_s20, %s23_s20   ;;  %s1313_s19 = sphi %s1389_s19, %s1663_s19   ;;  %s1309_s18 = sphi %s1387_s18, %s1662_s18   ;;  %s1305_s17 = sphi %s1385_s17, %s1661_s17   ;;  %s1301_s16 = sphi %s1383_s16, %s1660_s16   ;;  %s1297_s15 = sphi %s1381_s15, %s1659_s15   ;;  %s1293_s14 = sphi %s1379_s14, %s1665_s14   ;;  %s1289_s13 = sphi %s1377_s13, %s1664_s13  }
   0x8   : > { %1637 = sst [smem:[#allocation7_spill]] %s1297_s15  ;;  %s1096_s22 = sadd.s32 4294967294, %s1317_s20  }
   0x9   : > { %1638 = sst [smem:[#allocation8_spill]] %s1305_s17  ;;  %s32_s23 = sadd.s32 1, %s1309_s18 }
   0xa   : > { %1639 = sst [smem:[#allocation9_spill]] %s1309_s18  ;;  %p33_p0 = scmp.ge.s32.totalorder %s32_s23, 2 }
   0xb   : > { %1640 = sst [smem:[#allocation10_spill]] %s1313_s19  ;;  %s35_s24 = sadd.s32 1, %s1313_s19 }
   0xc   : > { %1641 = sst [smem:[#allocation11_spill]] %s1317_s20  ;;  %p292_p1 = scmp.ne.s32.totalorder %s1297_s15, %s1293_s14 }
   0xd   : > { %p293_p2 = scmp.eq.s32.totalorder %s1095_s21, 3  ;;  %s1667_s23 = smov (%p33_p0, %s32_s23), 0 }
   0xe   : > { %1642 = sst [smem:[#allocation12_spill]] %s1667_s23  ;;  %s1669_s24 = smov (!%p33_p0, %s35_s24), %s1313_s19 }
   0xf   : > { %p1426_p3 = por %p293_p2, %p292_p1  ;;  %p298_p4 = scmp.ne.s32.totalorder %s1293_s14, %s1289_s13 }
  0x10   : > { %p37_p5 = scmp.ge.s32.totalorder %s1669_s24, 2  ;;  %p299_p6 = scmp.eq.s32.totalorder %s1096_s22, 3 }
  0x11   : > { %s1643_s25 = scalar_select %p1426_p3, 1, 0 }
  0x12   : > { %p1099_p7 = scmp.ge.s32.totalorder %s1317_s20, 1  ;;  %p371_p8 = scmp.lt.s32.totalorder %s1317_s20, 5 }
  0x13   : > { %1644 = sst [smem:[#allocation13_spill]] %s1643_s25  ;;  %s1671_s24 = smov (%p37_p5, %s1669_s24), 0 }
  0x14   : > { %1645 = sst [smem:[#allocation14_spill]] %s1671_s24  ;;  %p1436_p9 = por %p299_p6, %p298_p4 }
  0x15   : > { %p372_p10 = pnand %p1099_p7, %p371_p8  ;;  %s279_s27 = ssub.s32 %s1313_s19, %s1671_s24 }
  0x16   : > { %s1646_s26 = scalar_select %p1436_p9, 1, 0 }
  0x17   : > { %s282_s28 = sadd.s32 1, %s1297_s15  ;;  %p280_p11 = scmp.eq.s32.totalorder %s279_s27, 0 }
  0x18   : > { %1647 = sst [smem:[#allocation15_spill]] %s1646_s26  ;;  %375 = sbr.rel (%p372_p10) target bundleno = 1750 (0x6d6), region = 60 }
  0x19   : > { %s1444_s29 = scalar_select %p280_p11, %s1297_s15, %s282_s28  }
  0x1a   : > { %p427_p12 = scmp.lt.s32.totalorder (!%p372_p10), %s1305_s17, 1  ;;  %p438_p13 = scmp.lt.s32.totalorder (!%p372_p10), %s1301_s16, 1 }
  0x1b   : > { %1648 = sst [smem:[#allocation16_spill]] %s1444_s29  ;;  %s1649_s24 = sand.u32 (!%p372_p10), 1, %s1293_s14  }
  0x1c   : > { %p1106_p0 = scmp.ne.s32.totalorder (!%p372_p10), %s1301_s16, 0 }
  0x1d   : > { %s1450_s11 = scalar_select %p427_p12, %s1305_s17, 1 }
  0x1e   : > { %s1453_s12 = scalar_select %p438_p13, %s1301_s16, 1 }
  0x1f   : > { %s1100_s21 = sshll.u32 %s1450_s11, 3  ;;  %s1101_s19 = sshll.u32 %s1450_s11, 2 }
  0x20   : > { %s430_s30 = scalar_lea.vmem %s1612_s0, %s1100_s21  ;;  %s1467_s15 = scalar_lea.vmem %s1618_s6, %s1101_s19 }
  0x21   : > { %s1120_s26 = sshll.u32 %s1453_s12, 5  ;;  %s445_s22 = scalar_lea.vmem %s1620_s8, %s1453_s12 }
  0x22   : > { %s1473_s25 = scalar_lea.vmem %s1619_s7, %s1120_s26  ;;  %s1482_s23 = scalar_lea.vmem %s1621_s9, %s1120_s26 }
  0x23   : > { %s1486_s21 = scalar_lea.vmem [#allocation3], %s1649_s24  ;;  %455 = sbr.rel (%p1106_p0) target bundleno = 234 (0xea), region = 64 }
  0x28   : > { %v461_v0 = vld [vmem:[%s1613_s1 + $0x20] sm:$0xff]  ;;  %v462_v1 = vld [vmem:[%s1613_s1 + $0x28] sm:$0xff]  ;;  %v459_v2 = vld [vmem:[%s1613_s1 + $0x10] sm:$0xff]  ;;  %vm471_vm0 = vcmask 392192   ;;  %vm532_vm5 = vcmask 261120  }
  0x29   : > { %v466_v3 = vpack.c.bf16 %v462_v1, %v461_v0  ;;  %v460_v4 = vld [vmem:[%s1613_s1 + $0x18] sm:$0xff]  ;;  %v457_v6 = vld [vmem:[%s1613_s1] sm:$0xff]  ;;  %v458_v7 = vld [vmem:[%s1613_s1 + $0x8] sm:$0xff] }
  0x2a   : > { %v465_v5 = vpack.c.bf16 %v460_v4, %v459_v2  ;;  %v464_v8 = vpack.c.bf16 %v458_v7, %v457_v6  ;;  %v456_v9 = vld [vmem:[%s430_s30] sm:$0xff] }
  0x2b   : > { %480 = vmatpush.bf16.msra.mxu0 %v466_v3  ;;  %v463_v10 = vpack.c.bf16 %v456_v9, %v456_v9  ;;  %v1198_v11 = vld [vmem:[%s1614_s2] ss:$0 sm:$0xff] }
  0x2f   : > { %481 = vmatpush.bf16.msra.mxu0 %v465_v5 }
  0x33   : > { %482 = vmatpush.bf16.msra.mxu0 %v464_v8 }
  0x36   : > { %1107 = vmatmul.msk.bf16.vlgmr.msra.gmra.mxu0 %vm471_vm0, %v463_v10 }
  0xb3   : > { %v484_v12 = vpop.f32.mrf.mxu0 }
  0xb4   : > { %v485_v13 = vadd.f32 %v1198_v11, %v484_v12 }
  0xb6   : > { %v489_v14 = vmul.f32 0.70710677, %v485_v13  ;;  %v488_v51 = vmul.f32 0.5, %v485_v13 }
  0xb8   : > { %v490_v15 = vmul.f32 %v489_v14, %v489_v14 }
  0xba   : > { %v491_v16 = vmin.f32 %v490_v15, 16.0 }
  0xbb   : > { %v486_v17 = vpop.f32.mrf.mxu0 }
  0xbc   : > { %v492_v18 = vmul.f32 2.1237322e-06, %v491_v16  ;;  %v503_v19 = vmul.f32 3.8918573e-05, %v491_v16 }
  0xbe   : > { %v493_v20 = vadd.f32 0.00028619796, %v492_v18  ;;  %v504_v21 = vadd.f32 0.001143296, %v503_v19 }
  0xc0   : > { %v494_v22 = vmul.f32 %v493_v20, %v491_v16  ;;  %v505_v23 = vmul.f32 %v504_v21, %v491_v16 }
  0xc2   : > { %v506_v24 = vadd.f32 0.014752088, %v505_v23  ;;  %v495_v25 = vadd.f32 0.0036580483, %v494_v22 }
  0xc4   : > { %v507_v26 = vmul.f32 %v506_v24, %v491_v16  ;;  %v496_v28 = vmul.f32 %v495_v25, %v491_v16 }
  0xc6   : > { %v508_v27 = vadd.f32 0.112945676, %v507_v26  ;;  %v497_v31 = vadd.f32 0.05243302, %v496_v28 }
  0xc8   : > { %v509_v29 = vmul.f32 %v508_v27, %v491_v16  ;;  %v498_v34 = vmul.f32 %v497_v31, %v491_v16 }
  0xca   : > { %v510_v30 = vadd.f32 0.4994258, %v509_v29  ;;  %v499_v35 = vadd.f32 0.18741608, %v498_v34 }
  0xcc   : > { %v511_v32 = vmul.f32 %v510_v30, %v491_v16  ;;  %v500_v37 = vmul.f32 %v499_v35, %v491_v16 }
  0xce   : > { %v512_v33 = vadd.f32 1.0, %v511_v32  ;;  %v501_v41 = vadd.f32 1.1283791, %v500_v37 }
  0xd0   : > { %1199 = vrcp.f32 %v512_v33  ;;  %v524_v40 = vand.u32 2147483648, %v512_v33  ;;  %v522_v43 = vand.u32 2147483647, %v512_v33  ;;  %vm518_vm2 = vweird.f32 %v512_v33 }
  0xd1   : > { %v502_v46 = vmul.f32 %v501_v41, %v489_v14 }
  0xd2   : > { %v525_v45 = vor.u32 1.1754944e-38, %v524_v40  ;;  %vm523_vm4 = vcmp.eq.f32.partialorder %v522_v43, 8.507059e+37 }
  0xd6   : > { %v1200_v36 = vpop.eup %1199 }
  0xd7   : > { %v514_v38 = vmul.f32 %v1200_v36, %v512_v33  ;;  %vm519_vm1 = vweird.f32 %v1200_v36 }
  0xd8   : > { %vm520_vm3 = vmor %vm518_vm2, %vm519_vm1 }
  0xd9   : > { %v515_v39 = vsub.f32 1.0, %v514_v38 }
  0xdb   : > { %v516_v42 = vmul.f32 %v1200_v36, %v515_v39 }
  0xdd   : > { %v517_v44 = vadd.f32 %v1200_v36, %v516_v42 }
  0xdf   : > { %v521_v47 = vsel %vm520_vm3, %v1200_v36, %v517_v44 }
  0xe0   : > { %v526_v48 = vsel %vm523_vm4, %v525_v45, %v521_v47 }
  0xe1   : > { %v527_v49 = vmul.f32 %v526_v48, %v502_v46 }
  0xe3   : > { %v1108_v50 = vclamps-f32 %v527_v49, 1.0 }
  0xe5   : > { %v530_v52 = vadd.f32 1.0, %v1108_v50 }
  0xe7   : > { %v531_v53 = vmul.f32 %v530_v52, %v488_v51 }
  0xe9   : > { %533 = vst.msk [vmem:[#allocation2] sm:$0xff] %vm532_vm5, %v531_v53 }
  0xea PF: > { %v537_v54 = vld [vmem:[%s1473_s25 + $0x10] sm:$0xff]  ;;  %v538_v55 = vld [vmem:[%s1473_s25 + $0x18] sm:$0xff]  ;;  %v535_v56 = vld [vmem:[%s1473_s25] sm:$0xff]  ;;  %vm542_vm6 = vcmask 261120   ;;  %v1319_v2 = vmov 3   ;;  %vm667_vm7 = vcmask 1043456  }
  0xeb   : > { %v541_v57 = vpack.c.bf16 %v538_v55, %v537_v54  ;;  %v536_v58 = vld [vmem:[%s1473_s25 + $0x8] sm:$0xff]  ;;  %v562_v59 = vld [vmem:[%s1482_s23 + $0x18] sm:$0xff]  ;;  %v561_v60 = vld [vmem:[%s1482_s23 + $0x10] sm:$0xff]  ;;  %1202 = vset.pattern.permute.xlu1 %v1319_v2  ;;  %v1320_v7 = vmov 2   ;;  %s1321_s25 = smov 127   ;;  %vm634_vm10 = vcmask 64512  }
  0xec   : > { %578 = vmatpush.msra.mxu1 %v562_v59  ;;  %v540_v61 = vpack.c.bf16 %v536_v58, %v535_v56  ;;  %v560_v63 = vld [vmem:[%s1482_s23 + $0x8] sm:$0xff]  ;;  %v559_v1 = vld [vmem:[%s1482_s23] sm:$0xff]  ;;  %1201 = vset.pattern.permute.xlu0 %v1320_v7  ;;  %p1113_p1 = scmp.ge.s32.totalorder %s1301_s16, 1 }
  0xed   : > { %552 = vmatpush.bf16.msra.mxu0 %v541_v57  ;;  %v586_v11 = vld [vmem:[%s1467_s15] sm:$0xf] }
  0xee   : > { %579 = vmatpush.msra.mxu1 %v561_v60  ;;  %v587_v14 = vunpack.c.l.bf16 %v586_v11 }
  0xf0   : > { %v534_v62 = vld [vmem:[#allocation2] sm:$0xff]  ;;  %580 = vmatpush.msra.mxu1 %v560_v63  ;;  %vm588_vm8 = vcmp.gt.f32.partialorder %v587_v14, 0.0 }
  0xf1   : > { %v539_v0 = vpack.c.bf16 %v534_v62, %v534_v62  ;;  %553 = vmatpush.bf16.msra.mxu0 %v540_v61 }
  0xf2   : > { %581 = vmatpush.msra.mxu1 %v559_v1 }
  0xf4   : > { %1109 = vmatmul.msk.bf16.vlgmr.msra.gmra.mxu0 %vm542_vm6, %v539_v0 }
 0x171   : > { %v555_v3 = vpop.f32.mrf.mxu0 }
 0x172   : > { %v663_v4 = vpack.c.bf16 %v555_v3, %v555_v3  ;;  %1110 = vmatmul.msk.f32.vlgmr.msra.gmra.mxu1 %vm542_vm6, %v555_v3 }
 0x174   : > { %v669_v5 = vsel %vm667_vm7, %v663_v4, 0 }
 0x175   : > { %678 = vmatpush.bf16.msra.mxu2 %v669_v5  ;;  %771 = vmatpush.bf16.msra.mxu3 %v669_v5  ;;  %v1204_v5 = vld [vmem:[%s445_s22] ss:$0 sm:$0xff] }
 0x179   : > { %v557_v6 = vpop.f32.mrf.mxu0 }
 0x1ef   : > { %v583_v8 = vpop.f32.mrf.mxu1 }
 0x1f0   : > { %724 = vperm.xlu1 %1202, %v583_v8   ;;  %688 = vrot.lane.b32.xlu0 %v583_v8, %s1321_s25 }
 0x1f8   : > { %625 = vperm.xlu0 %1201, %v583_v8  }
 0x200   : > { %1203 = vset.pattern.permute.xlu0 %v1319_v2  ;;  %v589_v2 = vlaneseq }
 0x202   : > { %v590_v3 = vand.u32 127, %v589_v2 }
 0x204   : > { %vm757_vm4 = vcmp.ge.s32.totalorder %v590_v3, 16  ;;  %vm758_vm5 = vcmp.lt.s32.totalorder %v590_v3, 32  ;;  %vm660_vm7 = vcmp.lt.s32.totalorder %v590_v3, 16 }
 0x225   : > { %591 = vxpose.xlu1.b32.start.end [1/1] (short) (narrow) %v583_v8, 8 }
 0x262   : > { %v689_v9 = vpop.permute.xlu0 %688  ;;  %v725_v10 = vpop.permute.xlu1 %724 }
 0x263   : > { %691 = vxpose.xlu2.b32.start.end [1/1] (short) (narrow) %v689_v9, 8 }
 0x26a   : > { %v626_v15 = vpop.permute.xlu0 %625 }
 0x2c9   : > { %v607_v12 = vpop.trf.xlu1 }
 0x2ca   : > { %v628_v13 = vperm.slane %v607_v12, 0 }
 0x2cc   : > { %v629_v16 = vadd.f32 %v628_v13, %v626_v15 }
 0x2ce   : > { %vm630_vm9 = vcmp.ge.f32.partialorder %v629_v16, 0.0  ;;  %v631_v17 = vmul.f32 0.2, %v629_v16 }
 0x2d0   : > { %v632_v18 = vsel %vm630_vm9, %v629_v16, %v631_v17 }
 0x2d1   : > { %v633_v19 = vsel %vm588_vm8, %v632_v18, -1e+30 }
 0x2d2   : > { %v635_v20 = vsel %vm634_vm10, %v633_v19, -inf }
 0x2d4   : > { %636 = vmax.xlane.f32.xlu2 %v635_v20 }
 0x2fc   : > { %v707_v21 = vpop.trf.xlu2 }
 0x2fd   : > { %v727_v22 = vperm.slane %v707_v21, 0 }
 0x2ff   : > { %v728_v23 = vadd.f32 %v727_v22, %v725_v10 }
 0x301   : > { %vm729_vm11 = vcmp.ge.f32.partialorder %v728_v23, 0.0  ;;  %v730_v24 = vmul.f32 0.2, %v728_v23 }
 0x303   : > { %v731_v25 = vsel %vm729_vm11, %v728_v23, %v730_v24 }
 0x304   : > { %v732_v26 = vsel %vm588_vm8, %v731_v25, -1e+30  ;;  %vm759_vm8 = vmand %vm757_vm4, %vm758_vm5 }
 0x305   : > { %v733_v27 = vsel %vm634_vm10, %v732_v26, -inf }
 0x306   : > { %734 = vmax.xlane.f32.xlu0 %v733_v27 }
 0x347   : > { %v637_v28 = vpop.xlane.xlu2 %636 }
 0x348   : > { %v638_v29 = vsub.f32 %v633_v19, %v637_v28 }
 0x34a   : > { %v639_v30 = vmul.f32 1.442695, %v638_v29 }
 0x34c   : > { %1205 = vpow2.f32 %v639_v30 }
 0x352   : > { %v1206_v31 = vpop.eup %1205 }
 0x353   : > { %v641_v32 = vsel %vm634_vm10, %v1206_v31, 0.0 }
 0x354   : > { %642 = vadd.xlane.f32.xlu1 %v641_v32 }
 0x379   : > { %v735_v33 = vpop.xlane.xlu0 %734 }
 0x37a   : > { %v736_v34 = vsub.f32 %v732_v26, %v735_v33 }
 0x37c   : > { %v737_v35 = vmul.f32 1.442695, %v736_v34 }
 0x37e   : > { %1207 = vpow2.f32 %v737_v35 }
 0x384   : > { %v1208_v36 = vpop.eup %1207 }
 0x385   : > { %v739_v37 = vsel %vm634_vm10, %v1208_v36, 0.0 }
 0x386   : > { %740 = vadd.xlane.f32.xlu0 %v739_v37 }
 0x3c7   : > { %v643_v38 = vpop.xlane.xlu1 %642 }
 0x3c8   : > { %1209 = vrcp.f32 %v643_v38  ;;  %v655_v42 = vand.u32 2147483648, %v643_v38  ;;  %v653_v44 = vand.u32 2147483647, %v643_v38  ;;  %vm649_vm13 = vweird.f32 %v643_v38 }
 0x3ca   : > { %v656_v46 = vor.u32 1.1754944e-38, %v655_v42  ;;  %vm654_vm15 = vcmp.eq.f32.partialorder %v653_v44, 8.507059e+37 }
 0x3ce   : > { %v1210_v39 = vpop.eup %1209 }
 0x3cf   : > { %v645_v40 = vmul.f32 %v1210_v39, %v643_v38  ;;  %vm650_vm12 = vweird.f32 %v1210_v39 }
 0x3d0   : > { %vm651_vm14 = vmor %vm649_vm13, %vm650_vm12 }
 0x3d1   : > { %v646_v41 = vsub.f32 1.0, %v645_v40 }
 0x3d3   : > { %v647_v43 = vmul.f32 %v1210_v39, %v646_v41 }
 0x3d5   : > { %v648_v45 = vadd.f32 %v1210_v39, %v647_v43 }
 0x3d7   : > { %v652_v47 = vsel %vm651_vm14, %v1210_v39, %v648_v45 }
 0x3d8   : > { %v657_v48 = vsel %vm654_vm15, %v656_v46, %v652_v47 }
 0x3d9   : > { %v658_v49 = vmul.f32 %v1206_v31, %v657_v48 }
 0x3db   : > { %v662_v50 = vpack.c.bf16 %v658_v49, %v658_v49 }
 0x3dd   : > { %1111 = vmatmul.msk.bf16.vlgmr.msra.gmra.mxu2 %vm634_vm10, %v662_v50 }
 0x3f9   : > { %v741_v51 = vpop.xlane.xlu0 %740 }
 0x3fa   : > { %1211 = vrcp.f32 %v741_v51  ;;  %v753_v55 = vand.u32 2147483648, %v741_v51  ;;  %v751_v57 = vand.u32 2147483647, %v741_v51  ;;  %vm747_vm1 = vweird.f32 %v741_v51 }
 0x3fc   : > { %v754_v59 = vor.u32 1.1754944e-38, %v753_v55  ;;  %vm752_vm3 = vcmp.eq.f32.partialorder %v751_v57, 8.507059e+37 }
 0x400   : > { %v1212_v52 = vpop.eup %1211 }
 0x401   : > { %v743_v53 = vmul.f32 %v1212_v52, %v741_v51  ;;  %vm748_vm0 = vweird.f32 %v1212_v52 }
 0x402   : > { %vm749_vm2 = vmor %vm747_vm1, %vm748_vm0 }
 0x403   : > { %v744_v54 = vsub.f32 1.0, %v743_v53 }
 0x405   : > { %v745_v56 = vmul.f32 %v1212_v52, %v744_v54 }
 0x407   : > { %v746_v58 = vadd.f32 %v1212_v52, %v745_v56 }
 0x409   : > { %v750_v60 = vsel %vm749_vm2, %v1212_v52, %v746_v58 }
 0x40a   : > { %v755_v61 = vsel %vm752_vm3, %v754_v59, %v750_v60 }
 0x40b   : > { %v756_v62 = vmul.f32 %v1208_v36, %v755_v61 }
 0x40d   : > { %v760_v63 = vpack.c.bf16 %v756_v62, %v756_v62 }
 0x40f   : > { %1112 = vmatmul.msk.bf16.vlgmr.msra.gmra.mxu3 %vm634_vm10, %v760_v63 }
 0x460   : > { %v680_v0 = vpop.f32.mrf.mxu2 }
 0x461   : > { %v686_v6 = vsel %vm660_vm7, %v680_v0, 0.0 }
 0x468   : > { %v682_v1 = vpop.f32.mrf.mxu2 }
 0x492   : > { %v773_v4 = vpop.f32.mrf.mxu3 }
 0x493   : > { %v779_v7 = vsel %vm759_vm8, %v773_v4, 0.0 }
 0x494   : > { %v780_v8 = vadd.f32 %v779_v7, %v686_v6 }
 0x496   : > { %v1532_v9 = vadd.f32 %v1204_v5, %v780_v8  ;;  %789 = sbr.rel (%p1113_p1) target bundleno = 1192 (0x4a8), region = 68 }
 0x49a   : > { %v775_v10 = vpop.f32.mrf.mxu3 }
 0x49b   : > { %v791_v11 = vmul.f32 1.442695, %v1532_v9  ;;  %vm790_vm9 = vcmp.gt.f32.partialorder %v1532_v9, 0.0 }
 0x49d   : > { %1213 = vpow2.f32 %v791_v11 }
 0x4a3   : > { %v1214_v12 = vpop.eup %1213 }
 0x4a4   : > { %v1114_v13 = vadd.f32 -1.0, %v1214_v12 }
 0x4a6   : > { %v794_v14 = vsel %vm790_vm9, %v1532_v9, %v1114_v13 }
 0x4a7   : > { %795 = vst.msk [vmem:[#allocation2] sm:$0xff] %vm542_vm6, %v794_v14 }
 0x4a8 PF: > { %p1115_p2 = scmp.ne.s32.totalorder %s1301_s16, 1 }
 0x4a9   : > { %s1650_s27 = scalar_lea.vmem (!%p1115_p2), %s1615_s3, %s1450_s11 }
 0x4aa   : > { %799 = sbr.rel (%p1115_p2) target bundleno = 1729 (0x6c1), region = 72 }
 0x4af   : > { %v803_v15 = vld [vmem:[%s1616_s4 + $0x10] sm:$0xff]  ;;  %v804_v16 = vld [vmem:[%s1616_s4 + $0x18] sm:$0xff]  ;;  %v801_v17 = vld [vmem:[%s1616_s4] sm:$0xff]  ;;  %vm891_vm14 = vcmask 253952   ;;  %v874_v7 = vmul.f32 %v1532_v9, %v1532_v9  ;;  %vm960_vm7 = vcmask 57344  }
 0x4b0   : > { %v807_v18 = vpack.c.bf16 %v804_v16, %v803_v15  ;;  %v802_v19 = vld [vmem:[%s1616_s4 + $0x8] sm:$0xff]  ;;  %v800_v21 = vld [vmem:[%s1650_s27] sm:$0x1] }
 0x4b1   : > { %v806_v20 = vpack.c.bf16 %v802_v19, %v801_v17  ;;  %v805_v22 = vpack.c.bf16 %v800_v21, %v800_v21  ;;  %v808_v23 = vld [vmem:[%s1617_s5] sm:$0x1]  ;;  %v875_v8 = vsel %vm542_vm6, %v874_v7, 0.0 }
 0x4b2   : > { %818 = vmatpush.bf16.msra.mxu0 %v807_v18 }
 0x4b6   : > { %819 = vmatpush.bf16.msra.mxu0 %v806_v20 }
 0x4b9   : > { %1116 = vmatmul.msk.bf16.vlgmr.msra.gmra.mxu0 %vm542_vm6, %v805_v22 }
 0x536   : > { %v821_v24 = vpop.f32.mrf.mxu0 }
 0x537   : > { %v822_v25 = vadd.f32 %v821_v24, %v808_v23 }
 0x539   : > { %v826_v26 = vmul.f32 0.70710677, %v822_v25  ;;  %v825_v63 = vmul.f32 0.5, %v822_v25 }
 0x53b   : > { %v827_v27 = vmul.f32 %v826_v26, %v826_v26 }
 0x53d   : > { %v828_v28 = vmin.f32 %v827_v27, 16.0 }
 0x53e   : > { %v823_v29 = vpop.f32.mrf.mxu0 }
 0x53f   : > { %v829_v30 = vmul.f32 2.1237322e-06, %v828_v28  ;;  %v840_v31 = vmul.f32 3.8918573e-05, %v828_v28 }
 0x541   : > { %v830_v32 = vadd.f32 0.00028619796, %v829_v30  ;;  %v841_v33 = vadd.f32 0.001143296, %v840_v31 }
 0x543   : > { %v831_v34 = vmul.f32 %v830_v32, %v828_v28  ;;  %v842_v35 = vmul.f32 %v841_v33, %v828_v28 }
 0x545   : > { %v843_v36 = vadd.f32 0.014752088, %v842_v35  ;;  %v832_v37 = vadd.f32 0.0036580483, %v831_v34 }
 0x547   : > { %v844_v38 = vmul.f32 %v843_v36, %v828_v28  ;;  %v833_v40 = vmul.f32 %v832_v37, %v828_v28 }
 0x549   : > { %v845_v39 = vadd.f32 0.112945676, %v844_v38  ;;  %v834_v43 = vadd.f32 0.05243302, %v833_v40 }
 0x54b   : > { %v846_v41 = vmul.f32 %v845_v39, %v828_v28  ;;  %v835_v46 = vmul.f32 %v834_v43, %v828_v28 }
 0x54d   : > { %v847_v42 = vadd.f32 0.4994258, %v846_v41  ;;  %v836_v47 = vadd.f32 0.18741608, %v835_v46 }
 0x54f   : > { %v848_v44 = vmul.f32 %v847_v42, %v828_v28  ;;  %v837_v49 = vmul.f32 %v836_v47, %v828_v28 }
 0x551   : > { %v849_v45 = vadd.f32 1.0, %v848_v44  ;;  %v838_v53 = vadd.f32 1.1283791, %v837_v49 }
 0x553   : > { %1215 = vrcp.f32 %v849_v45  ;;  %v861_v52 = vand.u32 2147483648, %v849_v45  ;;  %v859_v55 = vand.u32 2147483647, %v849_v45  ;;  %vm855_vm11 = vweird.f32 %v849_v45 }
 0x554   : > { %v839_v58 = vmul.f32 %v838_v53, %v826_v26 }
 0x555   : > { %v862_v57 = vor.u32 1.1754944e-38, %v861_v52  ;;  %vm860_vm13 = vcmp.eq.f32.partialorder %v859_v55, 8.507059e+37 }
 0x559   : > { %v1216_v48 = vpop.eup %1215 }
 0x55a   : > { %v851_v50 = vmul.f32 %v1216_v48, %v849_v45  ;;  %vm856_vm10 = vweird.f32 %v1216_v48 }
 0x55b   : > { %vm857_vm12 = vmor %vm855_vm11, %vm856_vm10 }
 0x55c   : > { %v852_v51 = vsub.f32 1.0, %v851_v50 }
 0x55e   : > { %v853_v54 = vmul.f32 %v1216_v48, %v852_v51 }
 0x560   : > { %v854_v56 = vadd.f32 %v1216_v48, %v853_v54 }
 0x562   : > { %v858_v59 = vsel %vm857_vm12, %v1216_v48, %v854_v56 }
 0x563   : > { %v863_v60 = vsel %vm860_vm13, %v862_v57, %v858_v59 }
 0x564   : > { %v864_v61 = vmul.f32 %v863_v60, %v839_v58 }
 0x566   : > { %v1117_v62 = vclamps-f32 %v864_v61, 1.0 }
 0x568   : > { %v867_v0 = vadd.f32 1.0, %v1117_v62 }
 0x56a   : > { %v868_v1 = vmul.f32 %v867_v0, %v825_v63 }
 0x56c   : > { %v890_v2 = vmul.f32 %v868_v1, %v868_v1  ;;  %v869_v3 = vperm.slane %v868_v1, 0 }
 0x56e   : > { %v892_v4 = vsel %vm891_vm14, %v890_v2, 0.0  ;;  %v870_v5 = vmul.f32 %v869_v3, %v1532_v9 }
 0x56f   : > { %893 = vadd.xlane.f32.xlu0 %v892_v4 }
 0x570   : > { %v871_v6 = vsel %vm542_vm6, %v870_v5, 0.0 }
 0x571   : > { %872 = vadd.xlane.f32.xlu1 %v871_v6 }
 0x577   : > { %876 = vadd.xlane.f32.xlu0 %v875_v8 }
 0x5e2   : > { %v894_v10 = vpop.xlane.xlu0 %893 }
 0x5e3   : > { %1217 = vrsqrt.f32 %v894_v10  ;;  %vm902_vm15 = vcmp.eq.f32.partialorder %v894_v10, inf  ;;  %v905_v23 = vand.u32 2147483648, %v894_v10  ;;  %vm904_vm6 = vcmp.eq.f32.partialorder %v894_v10, 0.0 }
 0x5e4   : > { %v873_v44 = vpop.xlane.xlu1 %872 }
 0x5e9   : > { %v1218_v11 = vpop.eup %1217 }
 0x5ea   : > { %v896_v12 = vmul.f32 %v1218_v11, %v894_v10  ;;  %v877_v13 = vpop.xlane.xlu0 %876 }
 0x5eb   : > { %1219 = vrsqrt.f32 %v877_v13  ;;  %vm885_vm0 = vcmp.eq.f32.partialorder %v877_v13, inf  ;;  %v888_v29 = vand.u32 2147483648, %v877_v13  ;;  %vm887_vm1 = vcmp.eq.f32.partialorder %v877_v13, 0.0 }
 0x5ec   : > { %v897_v14 = vmul.f32 %v1218_v11, %v896_v12 }
 0x5ee   : > { %v898_v15 = vmul.f32 0.5, %v897_v14 }
 0x5f0   : > { %v899_v16 = vsub.f32 1.5, %v898_v15 }
 0x5f1   : > { %v1220_v17 = vpop.eup %1219 }
 0x5f2   : > { %v900_v18 = vmul.f32 %v1218_v11, %v899_v16  ;;  %v879_v19 = vmul.f32 %v1220_v17, %v877_v13 }
 0x5f4   : > { %v901_v20 = vmul.f32 %v900_v18, %v894_v10  ;;  %v880_v21 = vmul.f32 %v1220_v17, %v879_v19 }
 0x5f6   : > { %v903_v9 = vsel %vm902_vm15, %v894_v10, %v901_v20  ;;  %v881_v22 = vmul.f32 0.5, %v880_v21 }
 0x5f7   : > { %v906_v25 = vsel %vm904_vm6, %v905_v23, %v903_v9 }
 0x5f8   : > { %v882_v24 = vsub.f32 1.5, %v881_v22  ;;  %v908_v27 = vmax.f32 %v906_v25, 1e-08 }
 0x5fa   : > { %v883_v26 = vmul.f32 %v1220_v17, %v882_v24  ;;  %v909_v32 = vperm.slane %v908_v27, 0 }
 0x5fc   : > { %v884_v28 = vmul.f32 %v883_v26, %v877_v13 }
 0x5fe   : > { %v886_v30 = vsel %vm885_vm0, %v877_v13, %v884_v28 }
 0x5ff   : > { %v889_v31 = vsel %vm887_vm1, %v888_v29, %v886_v30 }
 0x600   : > { %v907_v33 = vmax.f32 %v889_v31, 1e-08 }
 0x602   : > { %v910_v34 = vmul.f32 %v909_v32, %v907_v33 }
 0x604   : > { %1221 = vrcp.f32 %v910_v34  ;;  %v922_v38 = vand.u32 2147483648, %v910_v34  ;;  %v920_v40 = vand.u32 2147483647, %v910_v34  ;;  %vm916_vm3 = vweird.f32 %v910_v34 }
 0x606   : > { %v923_v42 = vor.u32 1.1754944e-38, %v922_v38  ;;  %vm921_vm5 = vcmp.eq.f32.partialorder %v920_v40, 8.507059e+37 }
 0x60a   : > { %v1222_v35 = vpop.eup %1221 }
 0x60b   : > { %v912_v36 = vmul.f32 %v1222_v35, %v910_v34  ;;  %vm917_vm2 = vweird.f32 %v1222_v35 }
 0x60c   : > { %vm918_vm4 = vmor %vm916_vm3, %vm917_vm2 }
 0x60d   : > { %v913_v37 = vsub.f32 1.0, %v912_v36 }
 0x60f   : > { %v914_v39 = vmul.f32 %v1222_v35, %v913_v37 }
 0x611   : > { %v915_v41 = vadd.f32 %v1222_v35, %v914_v39 }
 0x613   : > { %v919_v43 = vsel %vm918_vm4, %v1222_v35, %v915_v41 }
 0x614   : > { %v924_v45 = vsel %vm921_vm5, %v923_v42, %v919_v43 }
 0x615   : > { %v925_v46 = vmul.f32 %v924_v45, %v873_v44 }
 0x617   : > { %v926_v47 = vadd.f32 1.0, %v925_v46 }
 0x619   : > { %v927_v48 = vmul.f32 0.5, %v926_v47 }
 0x61b   : > { %928 = vxpose.xlu1.b32.start.end [1/1] (short) (narrow) %v927_v48, 8 }
 0x6bf   : > { %v944_v49 = vpop.trf.xlu1 }
 0x6c0   : > { %961 = vst.msk [vmem:[%s1486_s21] sm:$0x1] %vm960_vm7, %v944_v49 }
 0x6c1 PF: > { %s1651_s11 = sld [smem:[#allocation8_spill]]  ;;  %s973_s12 = sshll.u32 %s1486_s21, 4  ;;  %s974_s12 = int_to_ptr.vmem [resolvable:$true] %s973_s12 }
 0x6c2   : > { %s1652_s25 = sld [smem:[#allocation17_spill]]  ;;  %s1654_s23 = sand.u32 1, %s1293_s14  }
 0x6c3   : > { %s963_s20 = scalar_lea.sflag [#allocation4], %s1654_s23 }
 0x6c8   : > { %s971_s30 = scalar_lea.hbm %s1652_s25, %s1651_s11  ;;  %s1243_s16 = scalar_lea.hbm %s1652_s25, 2 }
 0x6c9   : > { %s975_s22 = sshll.u32 %s971_s30, 4  ;;  %s976_s22 = int_to_ptr.hbm [resolvable:$true] %s975_s22 }
 0x6ca   : > { %s1237_s10 = sshra.s32 %s976_s22, 4  ;;  %s1238_s10 = int_to_ptr.hbm [resolvable:$true] %s1237_s10 }
 0x6cb   : > { %s1239_s17 = scalar_lea.hbm %s1238_s10, 1  ;;  %p1244_p7 = scmp.lt.s32.totalorder %s1238_s10, %s1652_s25 }
 0x6cc   : > { %p1240_p4 = scmp.ne.s32.totalorder %s1238_s10, %s1239_s17  ;;  %p1245_p8 = scmp.lt.s32.totalorder %s1243_s16, %s1239_s17 }
 0x6ce   : > { %p1241_p5 = pnand %p1240_p4, %p1426_p3  ;;  %p1246_p10 = por %p1245_p8, %p1244_p7 }
 0x6d0   : > { %p1242_p6 = pneg %p1241_p5 }
 0x6d2   : > { %p1247_p11 = pnand %p1246_p10, %p1242_p6 }
 0x6d4   : > { %1250 = shalt.err (!%p1247_p11)
}
 0x6d5   : > { %1122 = dma.vmem_to_hbm [thread:$0]  (%p1426_p3), %s974_s12, 16, %s976_s22, %s963_s20  }
 0x6d6 PF: > { %s1655_s21 = sld [smem:[#allocation11_spill]] }
 0x6d7   : > { %s1656_s24 = sld [smem:[#allocation6_spill]] }
 0x6dc   : > { %p1128_p12 = scmp.ge.s32.totalorder %s1655_s21, 2 }
 0x6dd   : > { %s987_s11 = sand.u32 1, %s1656_s24  }
 0x6de   : > { %p1125_p13 = pnand %p1128_p12, %p1436_p9  ;;  %s988_s19 = scalar_lea.sflag [#allocation4], %s987_s11 }
 0x6e0   : > { %p1126_p0 = pneg %p1125_p13 }
 0x6e2   : > { %1284 = dma.done.wait (%p1126_p0), %s988_s19, 16  }
 0x6e3   : > { %1286 = vsyncadd (%p1126_p0), %s988_s19, 4294967280  ;;  %s23_s20 = sadd.s32 1, %s1655_s21   ;;  %s1658_s30 = sld [smem:[#allocation7_spill]] }
 0x6e4   : > { %p20_p1 = scmp.ge.s32.totalorder %s23_s20, 6   ;;  %s1659_s15 = sld [smem:[#allocation16_spill]] }
 0x6e5   : > { %s1660_s16 = sld [smem:[#allocation9_spill]]  ;;  %s1664_s13 = smov %s1293_s14 }
 0x6e6   : > { %s1661_s17 = sld [smem:[#allocation10_spill]]  ;;  %22 = sbr.rel (!%p20_p1) target bundleno = 7 (0x7), region = 122 }
 0x6e7   : > { %s1662_s18 = sld [smem:[#allocation12_spill]] }
 0x6e8   : > { %s1663_s19 = sld [smem:[#allocation14_spill]] }
 0x6e9   : > { %s1665_s14 = smov %s1658_s30 }
 0x6eb   :  { %993 = vsyncpa [#allocation4], 1 }
 0x6ec   :  { %995 = vsyncpa [#allocation4 + $0x1], 1 }

</bundles_post_ra>
